<compile_context>
chip_gen: v7x
topology: tpu7x:2x2x1
jax: 0.10.0
libtpu: 0.0.40
codegen_flags: <defaults>
</compile_context>

<pallas_src>
import numpy as np

import jax
import jax.numpy as jnp
from jax.experimental import pallas as pl
from jax.experimental.pallas import tpu as pltpu


# Layer dimensions (in_features, out_features) matching the PyTorch module.
_DIMS = ((5, 25), (25, 16), (16, 10), (10, 5), (5, 1))
_FIN = 5                      # raw input feature count
_PAD = 32                     # uniform padded layer width (>= max out_features)
_ONE = _PAD - 1               # row/col index carrying the constant 1 (bias trick)
_CHUNK = 512                  # inner lane chunk (multiple of 128, v5e-safe)
_MAX_CHUNKS = 8               # up to 4096 batch lanes per grid step


def _mlp_kernel(x_ref, w_ref, b1_ref, o_ref):
    # x_ref : (5, TB)          input features, batch on lanes
    # w_ref : (5, 32, 32)      padded weights; layers 2-5 carry bias in col 31
    #                          and a ones-preserving 1 at [31, 31]
    # b1_ref: (32, CHUNK)      layer-1 bias (rows 0..24) + ones row (row 31),
    #                          lane-replicated host-side
    # o_ref : (1, TB)          lane-dense output
    tb = x_ref.shape[1]
    n_chunks = tb // _CHUNK   # static

    # Static full unroll over lane chunks (equivalent to fori_loop(unroll=True));
    # lets the scheduler overlap MXU weight pushes/pops across chunks.
    for c in range(n_chunks):
        lo = c * _CHUNK
        xc = x_ref[:, lo:lo + _CHUNK]                              # (5, CHUNK)

        # Layer 1: (32, 5) @ (5, CHUNK) -> (32, CHUNK); bias + ones row added,
        # then ReLU (ReLU keeps the ones row at 1 and the padded rows at 0).
        h = jnp.dot(w_ref[0, :, 0:_FIN], xc,
                    preferred_element_type=jnp.float32)
        h = jnp.maximum(h + b1_ref[...], 0.0)

        # Layers 2-4: uniform (32, 32) @ (32, CHUNK) with bias folded in, ReLU.
        h = jnp.maximum(jnp.dot(w_ref[1], h,
                                preferred_element_type=jnp.float32), 0.0)
        h = jnp.maximum(jnp.dot(w_ref[2], h,
                                preferred_element_type=jnp.float32), 0.0)
        h = jnp.maximum(jnp.dot(w_ref[3], h,
                                preferred_element_type=jnp.float32), 0.0)

        # Layer 5: no ReLU; the scalar output lives in row 0.
        h = jnp.dot(w_ref[4], h, preferred_element_type=jnp.float32)

        o_ref[:, lo:lo + _CHUNK] = h[0:1, :].astype(o_ref.dtype)


def pack_params(params):
    """Pack weights/biases once, host-side (call outside the forward).

    params: list of (W, b) with W: (out_features, in_features) [PyTorch layout],
            b: (out_features,).
    Returns (wbuf (5, 32, 32) f32, b1buf (32, CHUNK) f32).
    """
    wbuf = np.zeros((len(_DIMS), _PAD, _PAD), np.float32)
    b1buf = np.zeros((_PAD, _CHUNK), np.float32)
    for l, ((fin, fout), (w, b)) in enumerate(zip(_DIMS, params)):
        w = np.asarray(w, np.float32)
        b = np.asarray(b, np.float32)
        wbuf[l, :fout, :fin] = w
        if l == 0:
            b1buf[:fout, :] = b[:, None]     # lane-replicated layer-1 bias
            b1buf[_ONE, :] = 1.0             # carrier "ones" row
        else:
            wbuf[l, :fout, _ONE] = b         # bias folded into column 31
            wbuf[l, _ONE, _ONE] = 1.0        # preserve the ones row
    return jnp.asarray(wbuf), jnp.asarray(b1buf)


def mlp_forward(x, wbuf, b1buf):
    """Forward pass. wbuf/b1buf come from pack_params (built once, reused)."""
    x = jnp.asarray(x, jnp.float32).reshape(-1, _FIN)   # like x.view(-1, 5)
    n = x.shape[0]

    # Pick the batch tile: up to _MAX_CHUNKS inner chunks per grid step, but
    # keep >= 2 grid steps whenever the batch allows (v7x has 2 TensorCores).
    total_chunks = -(-n // _CHUNK)
    cpb = min(_MAX_CHUNKS, max(1, -(-total_chunks // 2)))
    tb = cpb * _CHUNK
    n_pad = -(-n // tb) * tb

    if n_pad != n:
        x = jnp.pad(x, ((0, n_pad - n), (0, 0)))
    xt = x.T                                             # (5, n_pad), batch on lanes

    out = pl.pallas_call(
        _mlp_kernel,
        out_shape=jax.ShapeDtypeStruct((1, n_pad), jnp.float32),
        grid_spec=pltpu.PrefetchScalarGridSpec(
            num_scalar_prefetch=0,
            grid=(n_pad // tb,),
            in_specs=[
                pl.BlockSpec((_FIN, tb), lambda i: (0, i)),
                pl.BlockSpec((len(_DIMS), _PAD, _PAD), lambda i: (0, 0, 0)),
                pl.BlockSpec((_PAD, _CHUNK), lambda i: (0, 0)),
            ],
            out_specs=pl.BlockSpec((1, tb), lambda i: (0, i)),
        ),
        compiler_params=pltpu.CompilerParams(
            dimension_semantics=("parallel",)),
    )(xt, wbuf, b1buf)

    return out[0, :n].reshape(n, 1)


def init_params(key):
    """PyTorch-style Linear init: U(-1/sqrt(fan_in), +1/sqrt(fan_in)).

    Weights stored as (out_features, in_features); biases as (out_features,).
    """
    params = []
    for (fan_in, fan_out) in _DIMS:
        key, kw, kb = jax.random.split(key, 3)
        bound = 1.0 / (fan_in ** 0.5)
        w = jax.random.uniform(kw, (fan_out, fan_in), jnp.float32, -bound, bound)
        b = jax.random.uniform(kb, (fan_out,), jnp.float32, -bound, bound)
        params.append((w, b))
    return params


def reference_forward(x, params):
    h = jnp.asarray(x, jnp.float32).reshape(-1, _FIN)
    for i, (w, b) in enumerate(params):
        h = h @ jnp.asarray(w, jnp.float32).T + jnp.asarray(b, jnp.float32)
        if i < len(params) - 1:
            h = jnp.maximum(h, 0.0)
    return h


if __name__ == "__main__":
    key = jax.random.PRNGKey(0)
    kx, kp = jax.random.split(key)

    # Small deterministic example: 64 samples of 5 features (the training code
    # uses batch_size=64); any shape that flattens to (-1, 5) works.
    x = jax.random.normal(kx, (64, 5), jnp.float32)
    params = init_params(kp)

    # Param packing is hoisted: done once and reused across forward calls.
    wbuf, b1buf = pack_params(params)

    fwd = jax.jit(mlp_forward)
    out = jax.block_until_ready(fwd(x, wbuf, b1buf))

    ref = reference_forward(x, params)
    assert out.shape == (64, 1), out.shape
    max_err = float(jnp.max(jnp.abs(out - ref)))
    if not jnp.allclose(out, ref, atol=1e-3, rtol=1e-3):
        raise AssertionError(f"kernel/reference mismatch, max_err={max_err}")

    print("KERNEL_OK")
</pallas_src>

<mosaic_0001>
module attributes {stable_mosaic.version = 11 : i64} {
  func.func @_mlp_kernel(%arg0: i32, %arg1: memref<5x512xf32, #tpu.memory_space<vmem>>, %arg2: memref<5x32x32xf32, #tpu.memory_space<vmem>>, %arg3: memref<32x512xf32, #tpu.memory_space<vmem>>, %arg4: memref<1x512xf32, #tpu.memory_space<vmem>>) attributes {dimension_semantics = [#tpu.dimension_semantics<parallel>], iteration_bounds = array<i64: 1>, scalar_prefetch = 0 : i64, scratch_operands = 0 : i64, tpu.core_type = #tpu.core_type<tc>, window_params = [{transform_indices = @transform_0, window_bounds = array<i64: 5, 512>}, {pipeline_mode = #tpu.pipeline_mode<synchronous>, transform_indices = @transform_1, window_bounds = array<i64: 5, 32, 32>}, {pipeline_mode = #tpu.pipeline_mode<synchronous>, transform_indices = @transform_2, window_bounds = array<i64: 32, 512>}, {transform_indices = @transform_3, window_bounds = array<i64: 1, 512>}]} {
    %c0 = arith.constant 0 : index
    %c0_0 = arith.constant 0 : index
    %0 = vector.load %arg1[%c0, %c0_0] : memref<5x512xf32, #tpu.memory_space<vmem>>, vector<5x512xf32>
    %c0_1 = arith.constant 0 : index
    %c0_2 = arith.constant 0 : index
    %c0_3 = arith.constant 0 : index
    %1 = vector.load %arg2[%c0_1, %c0_2, %c0_3] : memref<5x32x32xf32, #tpu.memory_space<vmem>>, vector<1x32x5xf32>
    %2 = vector.shape_cast %1 : vector<1x32x5xf32> to vector<32x5xf32>
    %cst = arith.constant dense<0.000000e+00> : vector<32x512xf32>
    %3 = tpu.matmul %2, %0, %cst {dimension_numbers = #tpu.dot_dimension_numbers<[1], [0], [0], [1], [0, 0, 1, 1], [], []>} : vector<32x5xf32>, vector<5x512xf32>, vector<32x512xf32> -> vector<32x512xf32>
    %c0_4 = arith.constant 0 : index
    %c0_5 = arith.constant 0 : index
    %4 = vector.load %arg3[%c0_4, %c0_5] : memref<32x512xf32, #tpu.memory_space<vmem>>, vector<32x512xf32>
    %5 = arith.addf %3, %4 : vector<32x512xf32>
    %cst_6 = arith.constant 0.000000e+00 : f32
    %6 = vector.broadcast %cst_6 : f32 to vector<32x512xf32>
    %7 = arith.maximumf %5, %6 : vector<32x512xf32>
    %c1 = arith.constant 1 : index
    %c0_7 = arith.constant 0 : index
    %c0_8 = arith.constant 0 : index
    %8 = vector.load %arg2[%c1, %c0_7, %c0_8] : memref<5x32x32xf32, #tpu.memory_space<vmem>>, vector<1x32x32xf32>
    %9 = vector.shape_cast %8 : vector<1x32x32xf32> to vector<32x32xf32>
    %cst_9 = arith.constant dense<0.000000e+00> : vector<32x512xf32>
    %10 = tpu.matmul %9, %7, %cst_9 {dimension_numbers = #tpu.dot_dimension_numbers<[1], [0], [0], [1], [0, 0, 1, 1], [], []>} : vector<32x32xf32>, vector<32x512xf32>, vector<32x512xf32> -> vector<32x512xf32>
    %cst_10 = arith.constant 0.000000e+00 : f32
    %11 = vector.broadcast %cst_10 : f32 to vector<32x512xf32>
    %12 = arith.maximumf %10, %11 : vector<32x512xf32>
    %c2 = arith.constant 2 : index
    %c0_11 = arith.constant 0 : index
    %c0_12 = arith.constant 0 : index
    %13 = vector.load %arg2[%c2, %c0_11, %c0_12] : memref<5x32x32xf32, #tpu.memory_space<vmem>>, vector<1x32x32xf32>
    %14 = vector.shape_cast %13 : vector<1x32x32xf32> to vector<32x32xf32>
    %cst_13 = arith.constant dense<0.000000e+00> : vector<32x512xf32>
    %15 = tpu.matmul %14, %12, %cst_13 {dimension_numbers = #tpu.dot_dimension_numbers<[1], [0], [0], [1], [0, 0, 1, 1], [], []>} : vector<32x32xf32>, vector<32x512xf32>, vector<32x512xf32> -> vector<32x512xf32>
    %cst_14 = arith.constant 0.000000e+00 : f32
    %16 = vector.broadcast %cst_14 : f32 to vector<32x512xf32>
    %17 = arith.maximumf %15, %16 : vector<32x512xf32>
    %c3 = arith.constant 3 : index
    %c0_15 = arith.constant 0 : index
    %c0_16 = arith.constant 0 : index
    %18 = vector.load %arg2[%c3, %c0_15, %c0_16] : memref<5x32x32xf32, #tpu.memory_space<vmem>>, vector<1x32x32xf32>
    %19 = vector.shape_cast %18 : vector<1x32x32xf32> to vector<32x32xf32>
    %cst_17 = arith.constant dense<0.000000e+00> : vector<32x512xf32>
    %20 = tpu.matmul %19, %17, %cst_17 {dimension_numbers = #tpu.dot_dimension_numbers<[1], [0], [0], [1], [0, 0, 1, 1], [], []>} : vector<32x32xf32>, vector<32x512xf32>, vector<32x512xf32> -> vector<32x512xf32>
    %cst_18 = arith.constant 0.000000e+00 : f32
    %21 = vector.broadcast %cst_18 : f32 to vector<32x512xf32>
    %22 = arith.maximumf %20, %21 : vector<32x512xf32>
    %c4 = arith.constant 4 : index
    %c0_19 = arith.constant 0 : index
    %c0_20 = arith.constant 0 : index
    %23 = vector.load %arg2[%c4, %c0_19, %c0_20] : memref<5x32x32xf32, #tpu.memory_space<vmem>>, vector<1x32x32xf32>
    %24 = vector.shape_cast %23 : vector<1x32x32xf32> to vector<32x32xf32>
    %cst_21 = arith.constant dense<0.000000e+00> : vector<32x512xf32>
    %25 = tpu.matmul %24, %22, %cst_21 {dimension_numbers = #tpu.dot_dimension_numbers<[1], [0], [0], [1], [0, 0, 1, 1], [], []>} : vector<32x32xf32>, vector<32x512xf32>, vector<32x512xf32> -> vector<32x512xf32>
    %26 = vector.extract_strided_slice %25 {offsets = [0, 0], sizes = [1, 512], strides = [1, 1]} : vector<32x512xf32> to vector<1x512xf32>
    %c0_22 = arith.constant 0 : index
    %c0_23 = arith.constant 0 : index
    %27 = vector.load %arg4[%c0_22, %c0_23] : memref<1x512xf32, #tpu.memory_space<vmem>>, vector<1x512xf32>
    tpu.vector_store %arg4[%c0_22, %c0_23], %26 {strides = array<i32>} : memref<1x512xf32, #tpu.memory_space<vmem>>, vector<1x512xf32>,
    return
  }
  func.func @transform_0(%arg0: i32) -> (i32, i32) {
    %c0_i32 = arith.constant 0 : i32
    %c0_i32_0 = arith.constant 0 : i32
    return %c0_i32, %arg0 : i32, i32
  }
  func.func @transform_1(%arg0: i32) -> (i32, i32, i32) {
    %c0_i32 = arith.constant 0 : i32
    %c0_i32_0 = arith.constant 0 : i32
    %c0_i32_1 = arith.constant 0 : i32
    %c0_i32_2 = arith.constant 0 : i32
    return %c0_i32, %c0_i32_0, %c0_i32_1 : i32, i32, i32
  }
  func.func @transform_2(%arg0: i32) -> (i32, i32) {
    %c0_i32 = arith.constant 0 : i32
    %c0_i32_0 = arith.constant 0 : i32
    %c0_i32_1 = arith.constant 0 : i32
    return %c0_i32, %c0_i32_0 : i32, i32
  }
  func.func @transform_3(%arg0: i32) -> (i32, i32) {
    %c0_i32 = arith.constant 0 : i32
    %c0_i32_0 = arith.constant 0 : i32
    return %c0_i32, %arg0 : i32, i32
  }
}

</mosaic_0001>

<bundles_post_ra>
// kernel: mlp_forward.1
= control target key start
LH: loop header
LB: loop body
LE: loop exit
PB: predicated region body
PF: predicated region fallthrough
CT: control target
= control target key end

     0   :  { %8 = vsyncpa [#allocation3], 0  ;;  %s1454_s0 = inlined_call_operand.vmem [shape: f32[5,512], index: 0, kind: input, shape index: {}]   ;;  %s1455_s1 = inlined_call_operand.hbm [shape: f32[5,32,32], index: 1, kind: input, shape index: {}]   ;;  %s1456_s2 = inlined_call_operand.hbm [shape: f32[32,512], index: 2, kind: input, shape index: {}]   ;;  %s1457_s3 = inlined_call_operand.vmem [shape: f32[1,512], index: 3, kind: output, shape index: {}]  }
   0x1   :  { %9 = vsyncpa [#allocation5], 0  ;;  %s1307_s12 = smov [#allocation2]   ;;  %s1259_s16 = scalar_lea.hbm %s1455_s1, 2560 }
   0x2   :  { %s17_s13 = sshll.u32 %s1307_s12, 4  ;;  %p1260_p0 = scmp.ne.s32.totalorder %s1455_s1, %s1259_s16  ;;  %s18_s13 = int_to_ptr.vmem [resolvable:$true] %s17_s13 }
   0x3   :  { %p1263_p1 = scmp.lt.u32.totalorder %s1259_s16, %s1455_s1 }
   0x5   :  { %p1265_p2 = pnand %p1263_p1, %p1260_p0 }
   0x7   :  { %1268 = shalt.err (!%p1265_p2)
}
   0x8   :  { %s1269_s21 = scalar_lea.vmem %s18_s13, 2560  ;;  %p1274_p4 = scmp.lt.s32.totalorder %s18_s13, %s18_s13 }
   0x9   :  { %p1270_p3 = scmp.ne.s32.totalorder %s18_s13, %s1269_s21  ;;  %p1275_p5 = scmp.lt.s32.totalorder %s1269_s21, %s1269_s21 }
   0xb   :  { %p1276_p6 = por %p1275_p5, %p1274_p4 }
   0xd   :  { %p1277_p7 = pnand %p1276_p6, %p1270_p3 }
   0xf   :  { %1280 = shalt.err (!%p1277_p7)
}
  0x10   :  { %s1308_s22 = smov 128   ;;  %s1309_s23 = smov 8  }
  0x11   :  { %23 = dma.hbm_to_vmem [thread:$0]  %s1455_s1, 2560, %s18_s13, [#allocation3], %s1308_s22, %s1308_s22, %s1309_s23  }
  0x12   :  { %s1310_s26 = smov [#allocation4]   ;;  %s1281_s30 = scalar_lea.hbm %s1456_s2, 2048 }
  0x13   :  { %s29_s27 = sshll.u32 %s1310_s26, 4  ;;  %p1282_p8 = scmp.ne.s32.totalorder %s1456_s2, %s1281_s30  ;;  %s30_s27 = int_to_ptr.vmem [resolvable:$true] %s29_s27 }
  0x14   :  { %p1285_p9 = scmp.lt.u32.totalorder %s1281_s30, %s1456_s2 }
  0x16   :  { %p1287_p10 = pnand %p1285_p9, %p1282_p8 }
  0x18   :  { %1290 = shalt.err (!%p1287_p10)
}
  0x19   :  { %s1291_s8 = scalar_lea.vmem %s30_s27, 2048  ;;  %p1296_p12 = scmp.lt.s32.totalorder %s30_s27, %s30_s27 }
  0x1a   :  { %p1292_p11 = scmp.ne.s32.totalorder %s30_s27, %s1291_s8  ;;  %p1297_p13 = scmp.lt.s32.totalorder %s1291_s8, %s1291_s8 }
  0x1c   :  { %p1298_p0 = por %p1297_p13, %p1296_p12 }
  0x1e   :  { %p1299_p1 = pnand %p1298_p0, %p1292_p11 }
  0x20   :  { %1302 = shalt.err (!%p1299_p1)
}
  0x21   :  { %s1311_s1 = smov 512   ;;  %s1312_s9 = smov 32  }
  0x22   :  { %35 = dma.hbm_to_vmem [thread:$0]  %s1456_s2, 2048, %s30_s27, [#allocation5], %s1311_s1, %s1311_s1, %s1312_s9  }
  0x23   :  { %1303 = dma.done.wait [#allocation3], 2560  }
  0x24   :  { %1304 = vsyncadd [#allocation3], 4294964736 }
  0x25   :  { %1305 = dma.done.wait [#allocation5], 2048  }
  0x26   :  { %1306 = vsyncadd [#allocation5], 4294965248  ;;  %v1313_v0 = vmov 0.0   ;;  %vm79_vm0 = vcmask 1044480   ;;  %vm66_vm1 = vcmask 39936   ;;  %v46_v5 = vld [vmem:[#allocation2] sm:$0xff] }
  0x27   :  { %156 = vmatprep.mubr.f32.mxu0 %v1313_v0  ;;  %245 = vmatprep.mubr.f32.mxu1 %v1313_v0  ;;  %v43_v1 = vld [vmem:[%s1454_s0 + $0x8] sm:$0x1f]  ;;  %v45_v2 = vld [vmem:[%s1454_s0 + $0x18] sm:$0x1f]  ;;  %v42_v3 = vld [vmem:[%s1454_s0] sm:$0x1f] }
  0x28   :  { %1143 = vmatprep.subr.msk.mxu0 %vm79_vm0, %v43_v1  ;;  %1149 = vmatprep.subr.msk.mxu1 %vm79_vm0, %v45_v2  ;;  %v44_v4 = vld [vmem:[%s1454_s0 + $0x10] sm:$0x1f]  ;;  %v47_v6 = vld [vmem:[#allocation2 + $0x8] sm:$0xff]  ;;  %v49_v8 = vld [vmem:[#allocation2 + $0x18] sm:$0xff]  ;;  %vm291_vm2 = vcmask 261120  }
  0x29   :  { %1144 = vmatpush1.msk.msra.mxu0 %vm79_vm0, %v42_v3  ;;  %1150 = vmatpush1.msk.msra.mxu1 %vm79_vm0, %v44_v4  ;;  %v48_v7 = vld [vmem:[#allocation2 + $0x10] sm:$0xff]  ;;  %v50_v9 = vld [vmem:[#allocation4] sm:$0xff]  ;;  %v51_v13 = vld [vmem:[#allocation4 + $0x8] sm:$0xff] }
  0x2a   :  { %1145 = vmatmul.mubr.msk.f32.vlgmr.msra.gmra.mrb[0].mxu0 %vm66_vm1, %v46_v5  ;;  %1151 = vmatmul.mubr.msk.f32.vlgmr.msra.gmra.mrb[0].mxu1 %vm66_vm1, %v46_v5  ;;  %v52_v11 = vld [vmem:[#allocation4 + $0x10] sm:$0xff]  ;;  %v53_v15 = vld [vmem:[#allocation4 + $0x18] sm:$0xff]  ;;  %v54_v17 = vld [vmem:[#allocation4 + $0x20] sm:$0xff] }
  0x2b   :  { %162 = vmatprep.mubr.f32.mxu0 %v1313_v0  ;;  %251 = vmatprep.mubr.f32.mxu1 %v1313_v0  ;;  %v56_v18 = vld [vmem:[#allocation4 + $0x30] sm:$0xff]  ;;  %v55_v21 = vld [vmem:[#allocation4 + $0x28] sm:$0xff]  ;;  %v57_v22 = vld [vmem:[#allocation4 + $0x38] sm:$0xff] }
  0x2c   :  { %v58_v37 = vld [vmem:[#allocation4 + $0x40] sm:$0xff]  ;;  %v60_v38 = vld [vmem:[#allocation4 + $0x50] sm:$0xff]  ;;  %v59_v47 = vld [vmem:[#allocation4 + $0x48] sm:$0xff] }
  0x2d   :  { %v61_v49 = vld [vmem:[#allocation4 + $0x58] sm:$0xff]  ;;  %v62_v53 = vld [vmem:[#allocation4 + $0x60] sm:$0xff]  ;;  %v64_v54 = vld [vmem:[#allocation4 + $0x70] sm:$0xff] }
  0x2e   :  { %1146 = vmatmul.mubr.msk.f32.gmra.mrb[2].mxu0 %vm66_vm1, %v47_v6  ;;  %1152 = vmatmul.mubr.msk.f32.gmra.mrb[2].mxu1 %vm66_vm1, %v47_v6  ;;  %v63_v57 = vld [vmem:[#allocation4 + $0x68] sm:$0xff]  ;;  %v65_v58 = vld [vmem:[#allocation4 + $0x78] sm:$0xff] }
  0x2f   :  { %168 = vmatprep.mubr.f32.mxu0 %v1313_v0  ;;  %257 = vmatprep.mubr.f32.mxu1 %v1313_v0 }
  0x32   :  { %1147 = vmatmul.mubr.msk.f32.gmra.mrb[4].mxu0 %vm66_vm1, %v48_v7  ;;  %1153 = vmatmul.mubr.msk.f32.gmra.mrb[4].mxu1 %vm66_vm1, %v48_v7 }
  0x33   :  { %174 = vmatprep.mubr.f32.mxu0 %v1313_v0  ;;  %263 = vmatprep.mubr.f32.mxu1 %v1313_v0 }
  0x36   :  { %1148 = vmatmul.mubr.msk.f32.gmra.mrb[6].mxu0 %vm66_vm1, %v49_v8  ;;  %1154 = vmatmul.mubr.msk.f32.gmra.mrb[6].mxu1 %vm66_vm1, %v49_v8 }
  0x37   :  { %368 = vmatprep.mubr.f32.mxu0 %v1313_v0  ;;  %457 = vmatprep.mubr.f32.mxu1 %v1313_v0 }
  0xfd   :  { %v158_v10 = vpop.f32.mrb[0].mxu0  ;;  %v247_v12 = vpop.f32.mrb[0].mxu1 }
  0xfe   :  { %v160_v14 = vpop.f32.mrb[1].mxu0  ;;  %v249_v16 = vpop.f32.mrb[1].mxu1  ;;  %v159_v19 = vadd.f32 %v158_v10, %v50_v9  ;;  %v248_v20 = vadd.f32 %v247_v12, %v52_v11 }
  0xff   :  { %v161_v23 = vadd.f32 %v160_v14, %v51_v13  ;;  %v250_v24 = vadd.f32 %v249_v16, %v53_v15 }
 0x100   :  { %v270_v33 = vmax.f32 %v159_v19, 0.0  ;;  %v272_v34 = vmax.f32 %v248_v20, 0.0  ;;  %v288_v19 = vld [vmem:[#allocation2 + $0x28] sm:$0xff]  ;;  %v289_v20 = vld [vmem:[#allocation2 + $0x30] sm:$0xff] }
 0x101   :  { %v164_v25 = vpop.f32.mrb[2].mxu0  ;;  %v253_v26 = vpop.f32.mrb[2].mxu1  ;;  %v271_v39 = vmax.f32 %v161_v23, 0.0  ;;  %v273_v40 = vmax.f32 %v250_v24, 0.0 }
 0x102   :  { %v165_v27 = vadd.f32 %v164_v25, %v54_v17  ;;  %v254_v28 = vadd.f32 %v253_v26, %v56_v18  ;;  %v166_v29 = vpop.f32.mrb[3].mxu0  ;;  %v255_v30 = vpop.f32.mrb[3].mxu1  ;;  %v287_v18 = vld [vmem:[#allocation2 + $0x20] sm:$0xff] }
 0x103   :  { %v167_v31 = vadd.f32 %v166_v29, %v55_v21  ;;  %v256_v32 = vadd.f32 %v255_v30, %v57_v22  ;;  %v290_v21 = vld [vmem:[#allocation2 + $0x38] sm:$0xff] }
 0x104   :  { %v274_v35 = vmax.f32 %v165_v27, 0.0  ;;  %v276_v36 = vmax.f32 %v254_v28, 0.0 }
 0x105   :  { %v275_v41 = vmax.f32 %v167_v31, 0.0  ;;  %v277_v42 = vmax.f32 %v256_v32, 0.0  ;;  %v170_v43 = vpop.f32.mrb[4].mxu0  ;;  %v259_v44 = vpop.f32.mrb[4].mxu1 }
 0x106   :  { %v1189_v45 = vpack.c.bf16 %v274_v35, %v270_v33  ;;  %v1197_v46 = vpack.c.bf16 %v276_v36, %v272_v34  ;;  %v172_v48 = vpop.f32.mrb[5].mxu0  ;;  %v261_v50 = vpop.f32.mrb[5].mxu1  ;;  %v171_v55 = vadd.f32 %v170_v43, %v58_v37  ;;  %v260_v56 = vadd.f32 %v259_v44, %v60_v38 }
 0x107   :  { %v1187_v51 = vpack.c.bf16 %v275_v41, %v271_v39  ;;  %v1195_v52 = vpack.c.bf16 %v277_v42, %v273_v40  ;;  %v173_v59 = vadd.f32 %v172_v48, %v59_v47  ;;  %v262_v60 = vadd.f32 %v261_v50, %v61_v49 }
 0x108   :  { %v278_v6 = vmax.f32 %v171_v55, 0.0  ;;  %v280_v7 = vmax.f32 %v260_v56, 0.0 }
 0x109   :  { %v176_v61 = vpop.f32.mrb[6].mxu0  ;;  %v265_v62 = vpop.f32.mrb[6].mxu1  ;;  %1188 = vmatprep.subr.bf16.mxu0 %v1187_v51  ;;  %1196 = vmatprep.subr.bf16.mxu1 %v1195_v52  ;;  %v279_v10 = vmax.f32 %v173_v59, 0.0  ;;  %v281_v11 = vmax.f32 %v262_v60, 0.0 }
 0x10a   :  { %v177_v63 = vadd.f32 %v176_v61, %v62_v53  ;;  %v266_v1 = vadd.f32 %v265_v62, %v64_v54  ;;  %v178_v2 = vpop.f32.mrb[7].mxu0  ;;  %v267_v3 = vpop.f32.mrb[7].mxu1  ;;  %1190 = vmatpush1.bf16.msra.mxu0 %v1189_v45  ;;  %1198 = vmatpush1.bf16.msra.mxu1 %v1197_v46  ;;  %v499_v62 = vld [vmem:[#allocation2 + $0x40] sm:$0xff] }
 0x10b   :  { %v179_v4 = vadd.f32 %v178_v2, %v63_v57  ;;  %v268_v5 = vadd.f32 %v267_v3, %v65_v58  ;;  %v502_v2 = vld [vmem:[#allocation2 + $0x58] sm:$0xff] }
 0x10c   :  { %v282_v8 = vmax.f32 %v177_v63, 0.0  ;;  %v284_v9 = vmax.f32 %v266_v1, 0.0  ;;  %v500_v63 = vld [vmem:[#allocation2 + $0x48] sm:$0xff]  ;;  %v501_v1 = vld [vmem:[#allocation2 + $0x50] sm:$0xff] }
 0x10d   :  { %v283_v12 = vmax.f32 %v179_v4, 0.0  ;;  %v285_v13 = vmax.f32 %v268_v5, 0.0 }
 0x10e   :  { %v1193_v14 = vpack.c.bf16 %v282_v8, %v278_v6  ;;  %v1201_v15 = vpack.c.bf16 %v284_v9, %v280_v7 }
 0x10f   :  { %v1191_v16 = vpack.c.bf16 %v283_v12, %v279_v10  ;;  %v1199_v17 = vpack.c.bf16 %v285_v13, %v281_v11 }
 0x111   :  { %1192 = vmatprep.subr.bf16.mxu0 %v1191_v16  ;;  %1200 = vmatprep.subr.bf16.mxu1 %v1199_v17 }
 0x112   :  { %1194 = vmatpush1.bf16.msra.mxu0 %v1193_v14  ;;  %1202 = vmatpush1.bf16.msra.mxu1 %v1201_v15 }
 0x115   :  { %1155 = vmatmul.mubr.msk.f32.vlgmr.msra.gmra.mrb[8].mxu0 %vm291_vm2, %v287_v18  ;;  %1159 = vmatmul.mubr.msk.f32.vlgmr.msra.gmra.mrb[8].mxu1 %vm291_vm2, %v287_v18 }
 0x116   :  { %374 = vmatprep.mubr.f32.mxu0 %v1313_v0  ;;  %463 = vmatprep.mubr.f32.mxu1 %v1313_v0 }
 0x119   :  { %1156 = vmatmul.mubr.msk.f32.gmra.mrb[10].mxu0 %vm291_vm2, %v288_v19  ;;  %1160 = vmatmul.mubr.msk.f32.gmra.mrb[10].mxu1 %vm291_vm2, %v288_v19 }
 0x11a   :  { %380 = vmatprep.mubr.f32.mxu0 %v1313_v0  ;;  %469 = vmatprep.mubr.f32.mxu1 %v1313_v0 }
 0x11d   :  { %1157 = vmatmul.mubr.msk.f32.gmra.mrb[12].mxu0 %vm291_vm2, %v289_v20  ;;  %1161 = vmatmul.mubr.msk.f32.gmra.mrb[12].mxu1 %vm291_vm2, %v289_v20 }
 0x11e   :  { %386 = vmatprep.mubr.f32.mxu0 %v1313_v0  ;;  %475 = vmatprep.mubr.f32.mxu1 %v1313_v0 }
 0x121   :  { %1158 = vmatmul.mubr.msk.f32.gmra.mrb[14].mxu0 %vm291_vm2, %v290_v21  ;;  %1162 = vmatmul.mubr.msk.f32.gmra.mrb[14].mxu1 %vm291_vm2, %v290_v21 }
 0x122   :  { %579 = vmatprep.mubr.f32.mxu0 %v1313_v0  ;;  %668 = vmatprep.mubr.f32.mxu1 %v1313_v0 }
 0x1e8   :  { %v370_v22 = vpop.f32.mrb[8].mxu0  ;;  %v459_v23 = vpop.f32.mrb[8].mxu1 }
 0x1e9   :  { %v372_v24 = vpop.f32.mrb[9].mxu0  ;;  %v461_v25 = vpop.f32.mrb[9].mxu1  ;;  %v482_v28 = vmax.f32 %v370_v22, 0.0  ;;  %v484_v29 = vmax.f32 %v459_v23, 0.0 }
 0x1ea   :  { %v483_v34 = vmax.f32 %v372_v24, 0.0  ;;  %v485_v35 = vmax.f32 %v461_v25, 0.0 }
 0x1ec   :  { %v376_v26 = vpop.f32.mrb[10].mxu0  ;;  %v465_v27 = vpop.f32.mrb[10].mxu1 }
 0x1ed   :  { %v486_v30 = vmax.f32 %v376_v26, 0.0  ;;  %v488_v31 = vmax.f32 %v465_v27, 0.0  ;;  %v378_v32 = vpop.f32.mrb[11].mxu0  ;;  %v467_v33 = vpop.f32.mrb[11].mxu1 }
 0x1ee   :  { %v487_v36 = vmax.f32 %v378_v32, 0.0  ;;  %v489_v37 = vmax.f32 %v467_v33, 0.0 }
 0x1ef   :  { %v1205_v38 = vpack.c.bf16 %v486_v30, %v482_v28  ;;  %v1213_v39 = vpack.c.bf16 %v488_v31, %v484_v29 }
 0x1f0   :  { %v1203_v40 = vpack.c.bf16 %v487_v36, %v483_v34  ;;  %v1211_v41 = vpack.c.bf16 %v489_v37, %v485_v35  ;;  %v382_v42 = vpop.f32.mrb[12].mxu0  ;;  %v471_v43 = vpop.f32.mrb[12].mxu1 }
 0x1f1   :  { %v384_v44 = vpop.f32.mrb[13].mxu0  ;;  %v473_v45 = vpop.f32.mrb[13].mxu1  ;;  %v490_v48 = vmax.f32 %v382_v42, 0.0  ;;  %v492_v49 = vmax.f32 %v471_v43, 0.0  ;;  %v710_v43 = vld [vmem:[#allocation2 + $0x60] sm:$0xff] }
 0x1f2   :  { %1204 = vmatprep.subr.bf16.mxu0 %v1203_v40  ;;  %1212 = vmatprep.subr.bf16.mxu1 %v1211_v41  ;;  %v491_v54 = vmax.f32 %v384_v44, 0.0  ;;  %v493_v55 = vmax.f32 %v473_v45, 0.0  ;;  %v711_v44 = vld [vmem:[#allocation2 + $0x68] sm:$0xff]  ;;  %v712_v45 = vld [vmem:[#allocation2 + $0x70] sm:$0xff] }
 0x1f3   :  { %1206 = vmatpush1.bf16.msra.mxu0 %v1205_v38  ;;  %1214 = vmatpush1.bf16.msra.mxu1 %v1213_v39 }
 0x1f4   :  { %v388_v46 = vpop.f32.mrb[14].mxu0  ;;  %v477_v47 = vpop.f32.mrb[14].mxu1 }
 0x1f5   :  { %v494_v50 = vmax.f32 %v388_v46, 0.0  ;;  %v496_v51 = vmax.f32 %v477_v47, 0.0  ;;  %v390_v52 = vpop.f32.mrb[15].mxu0  ;;  %v479_v53 = vpop.f32.mrb[15].mxu1  ;;  %v713_v46 = vld [vmem:[#allocation2 + $0x78] sm:$0xff] }
 0x1f6   :  { %v495_v56 = vmax.f32 %v390_v52, 0.0  ;;  %v497_v57 = vmax.f32 %v479_v53, 0.0 }
 0x1f7   :  { %v1209_v58 = vpack.c.bf16 %v494_v50, %v490_v48  ;;  %v1217_v59 = vpack.c.bf16 %v496_v51, %v492_v49 }
 0x1f8   :  { %v1207_v60 = vpack.c.bf16 %v495_v56, %v491_v54  ;;  %v1215_v61 = vpack.c.bf16 %v497_v57, %v493_v55 }
 0x1fa   :  { %1208 = vmatprep.subr.bf16.mxu0 %v1207_v60  ;;  %1216 = vmatprep.subr.bf16.mxu1 %v1215_v61 }
 0x1fb   :  { %1210 = vmatpush1.bf16.msra.mxu0 %v1209_v58  ;;  %1218 = vmatpush1.bf16.msra.mxu1 %v1217_v59 }
 0x1fe   :  { %1163 = vmatmul.mubr.msk.f32.vlgmr.msra.gmra.mrb[16].mxu0 %vm291_vm2, %v499_v62  ;;  %1167 = vmatmul.mubr.msk.f32.vlgmr.msra.gmra.mrb[16].mxu1 %vm291_vm2, %v499_v62 }
 0x1ff   :  { %585 = vmatprep.mubr.f32.mxu0 %v1313_v0  ;;  %674 = vmatprep.mubr.f32.mxu1 %v1313_v0 }
 0x202   :  { %1164 = vmatmul.mubr.msk.f32.gmra.mrb[18].mxu0 %vm291_vm2, %v500_v63  ;;  %1168 = vmatmul.mubr.msk.f32.gmra.mrb[18].mxu1 %vm291_vm2, %v500_v63 }
 0x203   :  { %591 = vmatprep.mubr.f32.mxu0 %v1313_v0  ;;  %680 = vmatprep.mubr.f32.mxu1 %v1313_v0 }
 0x206   :  { %1165 = vmatmul.mubr.msk.f32.gmra.mrb[20].mxu0 %vm291_vm2, %v501_v1  ;;  %1169 = vmatmul.mubr.msk.f32.gmra.mrb[20].mxu1 %vm291_vm2, %v501_v1 }
 0x207   :  { %597 = vmatprep.mubr.f32.mxu0 %v1313_v0  ;;  %686 = vmatprep.mubr.f32.mxu1 %v1313_v0 }
 0x20a   :  { %1166 = vmatmul.mubr.msk.f32.gmra.mrb[22].mxu0 %vm291_vm2, %v502_v2  ;;  %1170 = vmatmul.mubr.msk.f32.gmra.mrb[22].mxu1 %vm291_vm2, %v502_v2 }
 0x20b   :  { %790 = vmatprep.mubr.f32.mxu0 %v1313_v0  ;;  %879 = vmatprep.mubr.f32.mxu1 %v1313_v0 }
 0x2d1   :  { %v581_v3 = vpop.f32.mrb[16].mxu0  ;;  %v670_v4 = vpop.f32.mrb[16].mxu1 }
 0x2d2   :  { %v583_v5 = vpop.f32.mrb[17].mxu0  ;;  %v672_v6 = vpop.f32.mrb[17].mxu1  ;;  %v693_v9 = vmax.f32 %v581_v3, 0.0  ;;  %v695_v10 = vmax.f32 %v670_v4, 0.0 }
 0x2d3   :  { %v694_v15 = vmax.f32 %v583_v5, 0.0  ;;  %v696_v16 = vmax.f32 %v672_v6, 0.0 }
 0x2d5   :  { %v587_v7 = vpop.f32.mrb[18].mxu0  ;;  %v676_v8 = vpop.f32.mrb[18].mxu1 }
 0x2d6   :  { %v697_v11 = vmax.f32 %v587_v7, 0.0  ;;  %v699_v12 = vmax.f32 %v676_v8, 0.0  ;;  %v589_v13 = vpop.f32.mrb[19].mxu0  ;;  %v678_v14 = vpop.f32.mrb[19].mxu1 }
 0x2d7   :  { %v698_v17 = vmax.f32 %v589_v13, 0.0  ;;  %v700_v18 = vmax.f32 %v678_v14, 0.0 }
 0x2d8   :  { %v1221_v19 = vpack.c.bf16 %v697_v11, %v693_v9  ;;  %v1229_v20 = vpack.c.bf16 %v699_v12, %v695_v10 }
 0x2d9   :  { %v1219_v21 = vpack.c.bf16 %v698_v17, %v694_v15  ;;  %v1227_v22 = vpack.c.bf16 %v700_v18, %v696_v16  ;;  %v593_v23 = vpop.f32.mrb[20].mxu0  ;;  %v682_v24 = vpop.f32.mrb[20].mxu1 }
 0x2da   :  { %v595_v25 = vpop.f32.mrb[21].mxu0  ;;  %v684_v26 = vpop.f32.mrb[21].mxu1  ;;  %v701_v29 = vmax.f32 %v593_v23, 0.0  ;;  %v703_v30 = vmax.f32 %v682_v24, 0.0  ;;  %v921_v24 = vld [vmem:[#allocation2 + $0x80] sm:$0xff] }
 0x2db   :  { %1220 = vmatprep.subr.bf16.mxu0 %v1219_v21  ;;  %1228 = vmatprep.subr.bf16.mxu1 %v1227_v22  ;;  %v702_v35 = vmax.f32 %v595_v25, 0.0  ;;  %v704_v36 = vmax.f32 %v684_v26, 0.0  ;;  %v922_v25 = vld [vmem:[#allocation2 + $0x88] sm:$0xff]  ;;  %v923_v26 = vld [vmem:[#allocation2 + $0x90] sm:$0xff] }
 0x2dc   :  { %1222 = vmatpush1.bf16.msra.mxu0 %v1221_v19  ;;  %1230 = vmatpush1.bf16.msra.mxu1 %v1229_v20 }
 0x2dd   :  { %v599_v27 = vpop.f32.mrb[22].mxu0  ;;  %v688_v28 = vpop.f32.mrb[22].mxu1 }
 0x2de   :  { %v705_v31 = vmax.f32 %v599_v27, 0.0  ;;  %v707_v32 = vmax.f32 %v688_v28, 0.0  ;;  %v601_v33 = vpop.f32.mrb[23].mxu0  ;;  %v690_v34 = vpop.f32.mrb[23].mxu1  ;;  %v924_v27 = vld [vmem:[#allocation2 + $0x98] sm:$0xff] }
 0x2df   :  { %v706_v37 = vmax.f32 %v601_v33, 0.0  ;;  %v708_v38 = vmax.f32 %v690_v34, 0.0  ;;  %v1314_v28 = vmov 1966171168  }
 0x2e0   :  { %v1225_v39 = vpack.c.bf16 %v705_v31, %v701_v29  ;;  %v1233_v40 = vpack.c.bf16 %v707_v32, %v703_v30  ;;  %v1110_v29 = vunpack.c.l.s4 %v1314_v28  ;;  %v1112_v30 = vlaneseq }
 0x2e1   :  { %v1223_v41 = vpack.c.bf16 %v706_v37, %v702_v35  ;;  %v1231_v42 = vpack.c.bf16 %v708_v38, %v704_v36 }
 0x2e2   :  { %v1111_v31 = vunpack.c.0.s8 %v1110_v29  ;;  %v1113_v32 = vshrl.u32 %v1112_v30, 7  ;;  %vm1134_vm3 = vcmp.lt.s32.totalorder %v1112_v30, 512 }
 0x2e3   :  { %1224 = vmatprep.subr.bf16.mxu0 %v1223_v41  ;;  %1232 = vmatprep.subr.bf16.mxu1 %v1231_v42 }
 0x2e4   :  { %1226 = vmatpush1.bf16.msra.mxu0 %v1225_v39  ;;  %1234 = vmatpush1.bf16.msra.mxu1 %v1233_v40  ;;  %v1114_v35 = vsub.s32 %v1111_v31, %v1113_v32 }
 0x2e7   :  { %1171 = vmatmul.mubr.msk.f32.vlgmr.msra.gmra.mrb[24].mxu0 %vm291_vm2, %v710_v43  ;;  %1175 = vmatmul.mubr.msk.f32.vlgmr.msra.gmra.mrb[24].mxu1 %vm291_vm2, %v710_v43 }
 0x2e8   :  { %796 = vmatprep.mubr.f32.mxu0 %v1313_v0  ;;  %885 = vmatprep.mubr.f32.mxu1 %v1313_v0 }
 0x2eb   :  { %1172 = vmatmul.mubr.msk.f32.gmra.mrb[26].mxu0 %vm291_vm2, %v711_v44  ;;  %1176 = vmatmul.mubr.msk.f32.gmra.mrb[26].mxu1 %vm291_vm2, %v711_v44 }
 0x2ec   :  { %802 = vmatprep.mubr.f32.mxu0 %v1313_v0  ;;  %891 = vmatprep.mubr.f32.mxu1 %v1313_v0 }
 0x2ef   :  { %1173 = vmatmul.mubr.msk.f32.gmra.mrb[28].mxu0 %vm291_vm2, %v712_v45  ;;  %1177 = vmatmul.mubr.msk.f32.gmra.mrb[28].mxu1 %vm291_vm2, %v712_v45 }
 0x2f0   :  { %808 = vmatprep.mubr.f32.mxu0 %v1313_v0  ;;  %897 = vmatprep.mubr.f32.mxu1 %v1313_v0 }
 0x2f3   :  { %1174 = vmatmul.mubr.msk.f32.gmra.mrb[30].mxu0 %vm291_vm2, %v713_v46  ;;  %1178 = vmatmul.mubr.msk.f32.gmra.mrb[30].mxu1 %vm291_vm2, %v713_v46 }
 0x2f4   :  { %1001 = vmatprep.mubr.f32.mxu0 %v1313_v0  ;;  %1084 = vmatprep.mubr.f32.mxu1 %v1313_v0 }
 0x3ba   :  { %v792_v47 = vpop.f32.mrb[24].mxu0  ;;  %v881_v48 = vpop.f32.mrb[24].mxu1 }
 0x3bb   :  { %v794_v49 = vpop.f32.mrb[25].mxu0  ;;  %v883_v50 = vpop.f32.mrb[25].mxu1  ;;  %v904_v53 = vmax.f32 %v792_v47, 0.0  ;;  %v906_v54 = vmax.f32 %v881_v48, 0.0 }
 0x3bc   :  { %v905_v59 = vmax.f32 %v794_v49, 0.0  ;;  %v907_v60 = vmax.f32 %v883_v50, 0.0 }
 0x3be   :  { %v798_v51 = vpop.f32.mrb[26].mxu0  ;;  %v887_v52 = vpop.f32.mrb[26].mxu1 }
 0x3bf   :  { %v908_v55 = vmax.f32 %v798_v51, 0.0  ;;  %v910_v56 = vmax.f32 %v887_v52, 0.0  ;;  %v800_v57 = vpop.f32.mrb[27].mxu0  ;;  %v889_v58 = vpop.f32.mrb[27].mxu1 }
 0x3c0   :  { %v909_v61 = vmax.f32 %v800_v57, 0.0  ;;  %v911_v62 = vmax.f32 %v889_v58, 0.0 }
 0x3c1   :  { %v1237_v63 = vpack.c.bf16 %v908_v55, %v904_v53  ;;  %v1245_v1 = vpack.c.bf16 %v910_v56, %v906_v54 }
 0x3c2   :  { %v1235_v2 = vpack.c.bf16 %v909_v61, %v905_v59  ;;  %v1243_v3 = vpack.c.bf16 %v911_v62, %v907_v60  ;;  %v804_v4 = vpop.f32.mrb[28].mxu0  ;;  %v893_v5 = vpop.f32.mrb[28].mxu1 }
 0x3c3   :  { %v806_v6 = vpop.f32.mrb[29].mxu0  ;;  %v895_v7 = vpop.f32.mrb[29].mxu1  ;;  %v912_v10 = vmax.f32 %v804_v4, 0.0  ;;  %v914_v11 = vmax.f32 %v893_v5, 0.0 }
 0x3c4   :  { %1236 = vmatprep.subr.bf16.mxu0 %v1235_v2  ;;  %1244 = vmatprep.subr.bf16.mxu1 %v1243_v3  ;;  %v913_v16 = vmax.f32 %v806_v6, 0.0  ;;  %v915_v17 = vmax.f32 %v895_v7, 0.0 }
 0x3c5   :  { %1238 = vmatpush1.bf16.msra.mxu0 %v1237_v63  ;;  %1246 = vmatpush1.bf16.msra.mxu1 %v1245_v1 }
 0x3c6   :  { %v810_v8 = vpop.f32.mrb[30].mxu0  ;;  %v899_v9 = vpop.f32.mrb[30].mxu1 }
 0x3c7   :  { %v916_v12 = vmax.f32 %v810_v8, 0.0  ;;  %v918_v13 = vmax.f32 %v899_v9, 0.0  ;;  %v812_v14 = vpop.f32.mrb[31].mxu0  ;;  %v901_v15 = vpop.f32.mrb[31].mxu1 }
 0x3c8   :  { %v917_v18 = vmax.f32 %v812_v14, 0.0  ;;  %v919_v19 = vmax.f32 %v901_v15, 0.0 }
 0x3c9   :  { %v1241_v20 = vpack.c.bf16 %v916_v12, %v912_v10  ;;  %v1249_v21 = vpack.c.bf16 %v918_v13, %v914_v11 }
 0x3ca   :  { %v1239_v22 = vpack.c.bf16 %v917_v18, %v913_v16  ;;  %v1247_v23 = vpack.c.bf16 %v919_v19, %v915_v17 }
 0x3cc   :  { %1240 = vmatprep.subr.bf16.mxu0 %v1239_v22  ;;  %1248 = vmatprep.subr.bf16.mxu1 %v1247_v23 }
 0x3cd   :  { %1242 = vmatpush1.bf16.msra.mxu0 %v1241_v20  ;;  %1250 = vmatpush1.bf16.msra.mxu1 %v1249_v21 }
 0x3d0   :  { %1179 = vmatmul.mubr.msk.f32.vlgmr.msra.gmra.mrb[32].mxu0 %vm291_vm2, %v921_v24  ;;  %1183 = vmatmul.mubr.msk.f32.vlgmr.msra.gmra.mrb[32].mxu1 %vm291_vm2, %v921_v24 }
 0x3d1   :  { %1007 = vmatprep.mubr.f32.mxu0 %v1313_v0  ;;  %1090 = vmatprep.mubr.f32.mxu1 %v1313_v0 }
 0x3d4   :  { %1180 = vmatmul.mubr.msk.f32.gmra.mrb[34].mxu0 %vm291_vm2, %v922_v25  ;;  %1184 = vmatmul.mubr.msk.f32.gmra.mrb[34].mxu1 %vm291_vm2, %v922_v25 }
 0x3d5   :  { %1011 = vmatprep.mubr.f32.mxu0 %v1313_v0  ;;  %1094 = vmatprep.mubr.f32.mxu1 %v1313_v0 }
 0x3d8   :  { %1181 = vmatmul.mubr.msk.f32.gmra.mrb[36].mxu0 %vm291_vm2, %v923_v26  ;;  %1185 = vmatmul.mubr.msk.f32.gmra.mrb[36].mxu1 %vm291_vm2, %v923_v26 }
 0x3d9   :  { %1015 = vmatprep.mubr.f32.mxu0 %v1313_v0  ;;  %1098 = vmatprep.mubr.f32.mxu1 %v1313_v0 }
 0x3dc   :  { %1182 = vmatmul.mubr.msk.f32.gmra.mrb[38].mxu0 %vm291_vm2, %v924_v27  ;;  %1186 = vmatmul.mubr.msk.f32.gmra.mrb[38].mxu1 %vm291_vm2, %v924_v27 }
 0x4a3   :  { %v1003_v33 = vpop.f32.mrb[32].mxu0  ;;  %v1086_v34 = vpop.f32.mrb[32].mxu1 }
 0x4a4   :  { %v1005_v36 = vpop.f32.mrb[33].mxu0  ;;  %v1088_v37 = vpop.f32.mrb[33].mxu1 }
 0x4a5   :  { %v1107_v38 = vcombine.low %v1003_v33, %v1005_v36  ;;  %v1108_v39 = vcombine.low %v1086_v34, %v1088_v37 }
 0x4a7   :  { %v1115_v40 = vrot.slane %v1107_v38, %v1114_v35  ;;  %v1122_v41 = vrot.slane %v1108_v39, %v1114_v35  ;;  %v1009_v0 = vpop.f32.mrb[34].mxu0  ;;  %v1092_v42 = vpop.f32.mrb[34].mxu1 }
 0x4a8   :  { %v1010_v43 = vpop.f32.mrb[35].mxu0  ;;  %v1093_v44 = vpop.f32.mrb[35].mxu1 }
 0x4a9   :  { %v1123_v45 = vcombine.low %v1115_v40, %v1122_v41 }
 0x4ab   :  { %v1130_v46 = vrot.slane %v1123_v45, %v1114_v35  ;;  %v1013_v47 = vpop.f32.mrb[36].mxu0  ;;  %v1096_v48 = vpop.f32.mrb[36].mxu1 }
 0x4ac   :  { %v1014_v49 = vpop.f32.mrb[37].mxu0  ;;  %v1097_v50 = vpop.f32.mrb[37].mxu1 }
 0x4ad   :  { %1136 = vst.msk [vmem:[%s1457_s3] sm:$0xf] %vm1134_vm3, %v1130_v46 }
 0x4af   :  { %v1017_v51 = vpop.f32.mrb[38].mxu0  ;;  %v1100_v52 = vpop.f32.mrb[38].mxu1 }
 0x4b0   :  { %v1018_v53 = vpop.f32.mrb[39].mxu0  ;;  %v1101_v54 = vpop.f32.mrb[39].mxu1 }
 0x4b1   :  { %1141 = vsyncpa [#allocation3], 1 }
 0x4b2   :  { %1142 = vsyncpa [#allocation5], 1 }

</bundles_post_ra>
